<compile_context>
chip_gen: v6e
topology: v6e:2x2x1
jax: 0.10.0
libtpu: 0.0.40
codegen_flags: <defaults>
</compile_context>

<pallas_src>
import functools

import jax
import jax.numpy as jnp
from jax.experimental import pallas as pl
from jax.experimental.pallas import tpu as pltpu


def _round_up(a, b):
    return (a + b - 1) // b * b


def _vmem_capacity_bytes():
    """Physical per-core VMEM (64 MiB on v7x, 128 MiB on v5e/v6e); safe default."""
    try:
        info = pltpu.get_tpu_info()
        for name in ("vmem_capacity_bytes", "vmem_size_bytes", "vmem_bytes"):
            cap = getattr(info, name, None)
            if cap:
                return int(cap)
    except Exception:  # e.g. interpret mode / query unavailable
        pass
    return 64 * 1024 * 1024


def _pick_tile_m(m_pad, bytes_per_lane, budget_bytes):
    """Largest lane tile (multiple of 128, divides m_pad, >=2 tiles when possible)
    whose double-buffered per-step bytes stay inside budget_bytes."""
    cands = [t for t in (4096, 2048, 1024, 512, 256, 128) if m_pad % t == 0]
    multi = [t for t in cands if m_pad // t >= 2]
    if multi:
        cands = multi
    for t in cands:                      # descending
        if 2 * bytes_per_lane * t <= budget_bytes:
            return t
    return cands[-1]


def _pad_group_channels(v, groups, cout_g, cout_g_pad):
    v = v.reshape(groups, cout_g)
    v = jnp.pad(v, ((0, 0), (0, cout_g_pad - cout_g)))
    return v.reshape(groups * cout_g_pad)


# ============================================================= fused (primary) kernel
def _fused_kernel(x_ref, w_ref, gamma_ref, beta_ref, out_ref,
                  conv_ref, sum_ref, csq_ref, *,
                  groups, cout_g_pad, tile_m, n_samples, l_out_pad, half_cols,
                  n_even, n_odd, count, eps):
    """Conv (im2col matmul) + BN stats + BN/ReLU/MaxPool(2); conv slab stays in VMEM.

    x_ref:      (G, KCg_pad, tile_m)      bf16  lane tile of im2col columns
    w_ref:      (G, Cout_g_pad, KCg_pad)  bf16  resident weights (taps folded in)
    gamma_ref:  (C_out_pad, 1)            f32   resident BN weight
    beta_ref:   (C_out_pad, 1)            f32   resident BN bias
    out_ref:    (N, C_out_pad, half_cols) outdt resident pooled output (written once)
    conv_ref:   (C_out_pad, M_pad)        f32   VMEM conv slab (never hits HBM)
    sum_ref:    (C_out_pad, 1)            f32   running per-channel sum
    csq_ref:    (C_out_pad, 1)            f32   centered sum of squares (pass 2)
    """
    i = pl.program_id(0)
    n_tiles = pl.num_programs(0)

    @pl.when(i == 0)
    def _init():
        sum_ref[...] = jnp.zeros_like(sum_ref)

    # ---- pass 1: conv for this lane tile (MXU) + per-channel sum partials ---------
    col0 = pl.multiple_of(i * tile_m, tile_m)

    def _one_group(g, r0):
        acc = jnp.dot(w_ref[g], x_ref[g], preferred_element_type=jnp.float32)
        conv_ref[pl.ds(r0, cout_g_pad), pl.ds(col0, tile_m)] = acc
        sum_ref[pl.ds(r0, cout_g_pad), :] += jnp.sum(acc, axis=1, keepdims=True)

    if groups <= 4:                      # small: static unroll, static row offsets
        for g in range(groups):
            _one_group(g, g * cout_g_pad)
    else:                                # large: visible loop keeps vreg pressure flat
        @pl.loop(0, groups)
        def _grp(g):
            _one_group(g, pl.multiple_of(g * cout_g_pad, 8))

    # ---- pass 2 (last step only): BN finalize + ReLU + MaxPool from the VMEM slab --
    @pl.when(i == n_tiles - 1)
    def _finalize():
        inv_count = 1.0 / count
        mean = sum_ref[...] * inv_count                     # (C_out_pad, 1)

        # Two-pass variance over the resident slab, masked to the valid columns
        # (padded columns are exactly 0 but (0-mean)^2 must not leak into var).
        csq_ref[...] = jnp.zeros_like(csq_ref)
        chunk = 128
        chunks_per_half = half_cols // chunk

        @pl.loop(0, n_samples)
        def _var_n(n):
            @pl.loop(0, 2)                                  # 0: even half, 1: odd half
            def _var_h(h):
                limit = jnp.where(h == 0, n_even, n_odd)    # valid cols in this half

                @pl.loop(0, chunks_per_half)
                def _var_j(j):
                    start = pl.multiple_of(
                        n * l_out_pad + h * half_cols + j * chunk, chunk)
                    vals = conv_ref[:, pl.ds(start, chunk)]
                    lane = (jax.lax.broadcasted_iota(jnp.int32, (1, chunk), 1)
                            + j * chunk)
                    valid = (lane < limit).astype(jnp.float32)
                    d = (vals - mean) * valid
                    csq_ref[...] += jnp.sum(d * d, axis=1, keepdims=True)

        var = csq_ref[...] * inv_count
        inv_std = jax.lax.rsqrt(var + eps)
        scale = gamma_ref[...] * inv_std
        shift = beta_ref[...] - scale * mean

        # BN affine + ReLU + MaxPool1d(2) = max(even half, odd half); every access
        # is a 128-aligned, lane-dense (C_out_pad, 128) block of the VMEM slab.
        @pl.loop(0, n_samples)
        def _pool_n(n):
            @pl.loop(0, chunks_per_half)
            def _pool_j(j):
                e0 = pl.multiple_of(n * l_out_pad + j * chunk, chunk)
                even = conv_ref[:, pl.ds(e0, chunk)]
                odd = conv_ref[:, pl.ds(e0 + half_cols, chunk)]
                y_e = jnp.maximum(even * scale + shift, 0.0)
                y_o = jnp.maximum(odd * scale + shift, 0.0)
                o0 = pl.multiple_of(j * chunk, chunk)
                out_ref[n, :, pl.ds(o0, chunk)] = (
                    jnp.maximum(y_e, y_o).astype(out_ref.dtype))


# ============================================================= fallback (big shapes)
def _conv_stats_kernel(x_ref, w_ref, conv_ref, stats_ref, *, groups, cout_g_pad):
    """Conv tile (bf16 out) + lane-dense per-tile BN partials.

    conv_ref:  (C_out_pad, tile_m)  bf16  conv tile (half the intermediate traffic)
    stats_ref: (1, C_out_pad, 128)  f32   col 0 = sum, col 1 = sum of squares
    """
    def _one_group(g, r0):
        acc = jnp.dot(w_ref[g], x_ref[g], preferred_element_type=jnp.float32)
        conv_ref[pl.ds(r0, cout_g_pad), :] = acc.astype(conv_ref.dtype)
        s = jnp.sum(acc, axis=1, keepdims=True)              # from the f32 accumulator
        s2 = jnp.sum(acc * acc, axis=1, keepdims=True)
        stats_ref[0, pl.ds(r0, cout_g_pad), :] = jnp.concatenate(
            [s, s2, jnp.zeros((cout_g_pad, 126), jnp.float32)], axis=1)

    if groups <= 4:
        for g in range(groups):
            _one_group(g, g * cout_g_pad)
    else:
        @pl.loop(0, groups)
        def _grp(g):
            _one_group(g, pl.multiple_of(g * cout_g_pad, 8))


def _bn_relu_pool_kernel(even_ref, odd_ref, scale_ref, shift_ref, out_ref):
    """BN affine + ReLU + MaxPool1d(2) on one (sample, pooled-L) tile (lane-dense)."""
    scale = scale_ref[...]
    shift = shift_ref[...]
    y_even = jnp.maximum(even_ref[...] * scale + shift, 0.0)
    y_odd = jnp.maximum(odd_ref[...] * scale + shift, 0.0)
    out_ref[...] = jnp.maximum(y_even, y_odd)[None].astype(out_ref.dtype)


def _conv_block_fallback(x_col, w_col, gamma_p, beta_p, out_dtype, *, groups,
                         cout_g_pad, C_out_pad, kcg_pad, M_pad, L_out_pad,
                         half_cols, N, count, eps, vmem_cap):
    """Two-call path for conv slabs that do not fit VMEM: bf16 intermediate,
    lane-dense stats, whole-pooled-sample blocks in kernel 2, megacore-friendly."""
    vlim = int(0.75 * vmem_cap)          # ~48 MiB on v7x, ~96 MiB on v5e/v6e

    # ---- kernel 1: conv matmul + fused lane-dense BN partials ---------------------
    lane_bytes = 2 * groups * kcg_pad + 2 * C_out_pad       # bf16 x-tile + bf16 conv
    tile_m = _pick_tile_m(M_pad, lane_bytes, vlim // 3)
    n_tiles = M_pad // tile_m
    conv_flat, stats = pl.pallas_call(
        functools.partial(_conv_stats_kernel, groups=groups, cout_g_pad=cout_g_pad),
        out_shape=(
            jax.ShapeDtypeStruct((C_out_pad, M_pad), jnp.bfloat16),
            jax.ShapeDtypeStruct((n_tiles, C_out_pad, 128), jnp.float32),
        ),
        grid_spec=pltpu.PrefetchScalarGridSpec(
            num_scalar_prefetch=0,
            grid=(n_tiles,),
            in_specs=[
                pl.BlockSpec((groups, kcg_pad, tile_m), lambda i: (0, 0, i),
                             pipeline_mode=pl.Buffered(3)),
                pl.BlockSpec((groups, cout_g_pad, kcg_pad), lambda i: (0, 0, 0)),
            ],
            out_specs=[
                pl.BlockSpec((C_out_pad, tile_m), lambda i: (0, i)),
                pl.BlockSpec((1, C_out_pad, 128), lambda i: (i, 0, 0)),
            ]),
        compiler_params=pltpu.CompilerParams(
            dimension_semantics=("parallel",),
            vmem_limit_bytes=vlim),
    )(x_col, w_col)

    # ---- BN finalize: O(C_out) scalar math (padded cols/channels contribute 0) ----
    sums = jnp.sum(stats[:, :, 0], axis=0)
    sumsq = jnp.sum(stats[:, :, 1], axis=0)
    mean = sums / count
    var = jnp.maximum(sumsq / count - mean * mean, 0.0)
    inv_std = jax.lax.rsqrt(var + eps)
    scale = (gamma_p[:, 0] * inv_std).reshape(C_out_pad, 1)
    shift = (beta_p[:, 0] - gamma_p[:, 0] * inv_std * mean).reshape(C_out_pad, 1)

    # ---- kernel 2: BN affine + ReLU + MaxPool1d(2), whole pooled sample per step ---
    tile_p = half_cols
    while 3 * 4 * C_out_pad * tile_p > vlim // 3 and tile_p % 256 == 0:
        tile_p //= 2
    blocks_per_sample = L_out_pad // tile_p
    half_blocks = half_cols // tile_p
    out_pad = pl.pallas_call(
        _bn_relu_pool_kernel,
        out_shape=jax.ShapeDtypeStruct((N, C_out_pad, half_cols), out_dtype),
        grid_spec=pltpu.PrefetchScalarGridSpec(
            num_scalar_prefetch=0,
            grid=(N, half_blocks),
            in_specs=[
                pl.BlockSpec((C_out_pad, tile_p),
                             lambda n, t: (0, n * blocks_per_sample + t)),
                pl.BlockSpec((C_out_pad, tile_p),
                             lambda n, t: (0, n * blocks_per_sample + half_blocks + t)),
                pl.BlockSpec((C_out_pad, 1), lambda n, t: (0, 0)),
                pl.BlockSpec((C_out_pad, 1), lambda n, t: (0, 0)),
            ],
            out_specs=pl.BlockSpec((1, C_out_pad, tile_p), lambda n, t: (n, 0, t)),
        ),
        compiler_params=pltpu.CompilerParams(
            dimension_semantics=("parallel", "parallel"),
            vmem_limit_bytes=vlim),
    )(conv_flat, conv_flat, scale, shift)
    return out_pad


# ======================================================================== wrapper
def conv_block(x, w, b, gamma, beta, *, stride=1, groups=1, eps=1e-5,
               force_fallback=False):
    """x: (N, C_in, L); w: (C_out, C_in//groups, K) (PyTorch Conv1d layout)."""
    del b  # Conv bias is exactly cancelled by training-mode BN mean subtraction.

    N, C_in, L = x.shape
    C_out, cin_g, K = w.shape
    assert C_in % groups == 0 and C_out % groups == 0 and cin_g == C_in // groups
    cout_g = C_out // groups
    L_out = (L - K) // stride + 1
    L_pool = L_out // 2
    assert L_pool >= 1
    out_dtype = x.dtype
    out_isize = jnp.dtype(out_dtype).itemsize

    # ---- padded / tiled geometry ---------------------------------------------------
    sub = 16 if out_isize == 2 else 8            # sublane(-pack) aligned channels
    cout_g_pad = _round_up(cout_g, sub)
    C_out_pad = groups * cout_g_pad
    kcg = K * cin_g                              # contraction dim (taps folded in)
    kcg_pad = _round_up(kcg, 16)
    L_out_pad = _round_up(L_out, 256)            # per-sample lane padding
    half_cols = L_out_pad // 2                   # pooled width per sample (mult of 128)
    n_even = (L_out + 1) // 2                    # valid columns in the even half
    n_odd = L_out // 2                           # valid columns in the odd half
    M_pad = N * L_out_pad                        # folded N*L lane axis of the matmul
    count = N * L_out                            # BN reduction count

    vmem_cap = _vmem_capacity_bytes()

    # ---- im2col + even/odd split (wrapper-side layout plumbing only) ---------------
    xf = x.astype(jnp.float32)
    taps = [xf[:, :, k:k + stride * (L_out - 1) + 1:stride] for k in range(K)]
    patches = jnp.stack(taps, axis=2)                        # (N, C_in, K, L_out)
    p = patches.reshape(N, groups, cin_g, K, L_out)
    p = jnp.transpose(p, (1, 3, 2, 0, 4))                    # (G, K, Cin_g, N, L_out)
    p = p.reshape(groups, kcg, N, L_out)
    p = jnp.pad(p, ((0, 0), (0, kcg_pad - kcg), (0, 0), (0, L_out_pad - L_out)))
    # Even/odd column split: MaxPool1d(2) becomes max(left half, right half) with
    # only aligned, lane-dense accesses inside the kernels.
    p = jnp.concatenate([p[..., 0::2], p[..., 1::2]], axis=-1)
    x_col = p.reshape(groups, kcg_pad, M_pad).astype(jnp.bfloat16)

    wr = w.astype(jnp.float32).reshape(groups, cout_g, cin_g, K)
    wr = jnp.transpose(wr, (0, 1, 3, 2)).reshape(groups, cout_g, kcg)
    w_col = jnp.pad(wr, ((0, 0), (0, cout_g_pad - cout_g), (0, kcg_pad - kcg)))
    w_col = w_col.astype(jnp.bfloat16)

    gamma_p = _pad_group_channels(gamma.astype(jnp.float32), groups, cout_g,
                                  cout_g_pad).reshape(C_out_pad, 1)
    beta_p = _pad_group_channels(beta.astype(jnp.float32), groups, cout_g,
                                 cout_g_pad).reshape(C_out_pad, 1)

    # ---- path selection: fused single kernel when the conv slab fits VMEM ----------
    fuse_budget = int(0.60 * vmem_cap)           # ~38 MiB on v7x, ~77 MiB on v5e/v6e
    tile_m = _pick_tile_m(M_pad, 2 * groups * kcg_pad, fuse_budget // 6)
    fuse_need = (4 * C_out_pad * M_pad                      # conv slab (f32 scratch)
                 + out_isize * N * C_out_pad * half_cols    # resident pooled output
                 + 2 * 2 * groups * kcg_pad * tile_m        # double-buffered x tiles
                 + 2 * 2 * groups * cout_g_pad * kcg_pad    # resident weights
                 + 64 * C_out_pad)                          # gamma/beta/sum/csq
    use_fused = ((not force_fallback) and fuse_need <= fuse_budget
                 and C_out_pad <= 256)

    if use_fused:
        n_tiles = M_pad // tile_m
        out_pad = pl.pallas_call(
            functools.partial(
                _fused_kernel, groups=groups, cout_g_pad=cout_g_pad, tile_m=tile_m,
                n_samples=N, l_out_pad=L_out_pad, half_cols=half_cols,
                n_even=n_even, n_odd=n_odd, count=count, eps=eps),
            out_shape=jax.ShapeDtypeStruct((N, C_out_pad, half_cols), out_dtype),
            grid_spec=pltpu.PrefetchScalarGridSpec(
                num_scalar_prefetch=0,
                grid=(n_tiles,),
                in_specs=[
                    pl.BlockSpec((groups, kcg_pad, tile_m), lambda i: (0, 0, i)),
                    pl.BlockSpec((groups, cout_g_pad, kcg_pad), lambda i: (0, 0, 0)),
                    pl.BlockSpec((C_out_pad, 1), lambda i: (0, 0)),
                    pl.BlockSpec((C_out_pad, 1), lambda i: (0, 0)),
                ],
                out_specs=pl.BlockSpec((N, C_out_pad, half_cols),
                                       lambda i: (0, 0, 0)),
                scratch_shapes=[
                    pltpu.VMEM((C_out_pad, M_pad), jnp.float32),   # conv slab
                    pltpu.VMEM((C_out_pad, 1), jnp.float32),       # running sum
                    pltpu.VMEM((C_out_pad, 1), jnp.float32),       # centered sum-sq
                ]),
            compiler_params=pltpu.CompilerParams(
                # Global BN statistics force a sequential sweep ("arbitrary"); the
                # win is zero intermediate HBM traffic (the review's top item).
                dimension_semantics=("arbitrary",),
                vmem_limit_bytes=int(0.80 * vmem_cap)),
        )(x_col, w_col, gamma_p, beta_p)
    else:
        out_pad = _conv_block_fallback(
            x_col, w_col, gamma_p, beta_p, out_dtype, groups=groups,
            cout_g_pad=cout_g_pad, C_out_pad=C_out_pad, kcg_pad=kcg_pad,
            M_pad=M_pad, L_out_pad=L_out_pad, half_cols=half_cols, N=N,
            count=count, eps=eps, vmem_cap=vmem_cap)

    # ---- unpad (wrapper-side slicing only) ------------------------------------------
    out = out_pad.reshape(N, groups, cout_g_pad, half_cols)[:, :, :cout_g, :L_pool]
    return out.reshape(N, C_out, L_pool)


# ======================================================================== reference
def _reference(x, w, b, gamma, beta, *, stride=1, groups=1, eps=1e-5):
    conv = jax.lax.conv_general_dilated(
        x, w, window_strides=(stride,), padding="VALID",
        dimension_numbers=("NCH", "OIH", "NCH"), feature_group_count=groups,
    ) + b[None, :, None]
    mean = conv.mean(axis=(0, 2), keepdims=True)
    var = ((conv - mean) ** 2).mean(axis=(0, 2), keepdims=True)
    y = (conv - mean) / jnp.sqrt(var + eps) * gamma[None, :, None] + beta[None, :, None]
    y = jnp.maximum(y, 0.0)
    Nn, Co, Lo = y.shape
    Lp = Lo // 2
    return jnp.max(y[:, :, :2 * Lp].reshape(Nn, Co, Lp, 2), axis=-1)


if __name__ == "__main__":
    # ConvBlock(in_channel=4, out_channel=8, kernel_size=3, stride=1, groups=1)
    N, C_in, L = 2, 4, 16
    C_out, K, stride, groups = 8, 3, 1, 1

    key = jax.random.PRNGKey(0)
    kx, kw, kb = jax.random.split(key, 3)
    # Inputs rounded to bf16-representable values: the kernel feeds the MXU bf16
    # (with f32 accumulation), so this keeps the comparison to the f32 reference tight.
    x = jax.random.normal(kx, (N, C_in, L), jnp.float32
                          ).astype(jnp.bfloat16).astype(jnp.float32)
    w = (jax.random.normal(kw, (C_out, C_in // groups, K), jnp.float32) * 0.1
         ).astype(jnp.bfloat16).astype(jnp.float32)
    b = jax.random.normal(kb, (C_out,), jnp.float32) * 0.1
    gamma = jnp.ones((C_out,), jnp.float32)    # nn.BatchNorm1d.__init__ default weight
    beta = jnp.zeros((C_out,), jnp.float32)    # nn.BatchNorm1d.__init__ default bias

    out = jax.block_until_ready(
        conv_block(x, w, b, gamma, beta, stride=stride, groups=groups))
    ref = _reference(x, w, b, gamma, beta, stride=stride, groups=groups)

    if out.shape != ref.shape:
        raise AssertionError(f"shape mismatch: {out.shape} vs {ref.shape}")
    if not jnp.allclose(out, ref, rtol=1e-3, atol=1e-3):
        raise AssertionError(f"mismatch: max abs err = {jnp.max(jnp.abs(out - ref))}")
    print("KERNEL_OK")
</pallas_src>

<mosaic_0001>
module attributes {stable_mosaic.version = 11 : i64} {
  func.func @_fused_kernel(%arg0: i32, %arg1: memref<1x16x256xbf16, #tpu.memory_space<vmem>>, %arg2: memref<1x8x16xbf16, #tpu.memory_space<vmem>>, %arg3: memref<8x1xf32, #tpu.memory_space<vmem>>, %arg4: memref<8x1xf32, #tpu.memory_space<vmem>>, %arg5: memref<2x8x128xf32, #tpu.memory_space<vmem>>, %arg6: memref<8x512xf32, #tpu.memory_space<vmem>>, %arg7: memref<8x1xf32, #tpu.memory_space<vmem>>, %arg8: memref<8x1xf32, #tpu.memory_space<vmem>>) attributes {dimension_semantics = [#tpu.dimension_semantics<arbitrary>], iteration_bounds = array<i64: 2>, scalar_prefetch = 0 : i64, scratch_operands = 3 : i64, tpu.core_type = #tpu.core_type<tc>, window_params = [{transform_indices = @transform_0, window_bounds = array<i64: 1, 16, 256>}, {pipeline_mode = #tpu.pipeline_mode<synchronous>, transform_indices = @transform_1, window_bounds = array<i64: 1, 8, 16>}, {pipeline_mode = #tpu.pipeline_mode<synchronous>, transform_indices = @transform_2, window_bounds = array<i64: 8, 1>}, {pipeline_mode = #tpu.pipeline_mode<synchronous>, transform_indices = @transform_3, window_bounds = array<i64: 8, 1>}, {pipeline_mode = #tpu.pipeline_mode<synchronous>, transform_indices = @transform_4, window_bounds = array<i64: 2, 8, 128>}]} {
    %c0_i32 = arith.constant 0 : i32
    %0 = arith.cmpi eq, %arg0, %c0_i32 : i32
    %1 = arith.extui %0 : i1 to i32
    %c0_i32_0 = arith.constant 0 : i32
    %2 = arith.cmpi ne, %1, %c0_i32_0 : i32
    scf.if %2 {
      %cst_13 = arith.constant 0.000000e+00 : f32
      %20 = vector.broadcast %cst_13 : f32 to vector<8x1xf32>
      %c0_14 = arith.constant 0 : index
      %c0_15 = arith.constant 0 : index
      %21 = vector.load %arg7[%c0_14, %c0_15] : memref<8x1xf32, #tpu.memory_space<vmem>>, vector<8x1xf32>
      tpu.vector_store %arg7[%c0_14, %c0_15], %20 {strides = array<i32>} : memref<8x1xf32, #tpu.memory_space<vmem>>, vector<8x1xf32>,
    } else {
    }
    %c256_i32 = arith.constant 256 : i32
    %3 = arith.muli %arg0, %c256_i32 : i32
    %4 = tpu.assume_multiple %3, 256 : i32
    %c0 = arith.constant 0 : index
    %c0_1 = arith.constant 0 : index
    %c0_2 = arith.constant 0 : index
    %5 = vector.load %arg2[%c0, %c0_1, %c0_2] : memref<1x8x16xbf16, #tpu.memory_space<vmem>>, vector<1x8x16xbf16>
    %6 = vector.shape_cast %5 : vector<1x8x16xbf16> to vector<8x16xbf16>
    %c0_3 = arith.constant 0 : index
    %c0_4 = arith.constant 0 : index
    %c0_5 = arith.constant 0 : index
    %7 = vector.load %arg1[%c0_3, %c0_4, %c0_5] : memref<1x16x256xbf16, #tpu.memory_space<vmem>>, vector<1x16x256xbf16>
    %8 = vector.shape_cast %7 : vector<1x16x256xbf16> to vector<16x256xbf16>
    %cst = arith.constant dense<0.000000e+00> : vector<8x256xf32>
    %9 = tpu.matmul %6, %8, %cst {dimension_numbers = #tpu.dot_dimension_numbers<[1], [0], [0], [1], [0, 0, 1, 1], [], []>} : vector<8x16xbf16>, vector<16x256xbf16>, vector<8x256xf32> -> vector<8x256xf32>
    %c0_6 = arith.constant 0 : index
    %10 = arith.index_cast %4 : i32 to index
    %11 = vector.load %arg6[%c0_6, %10] : memref<8x512xf32, #tpu.memory_space<vmem>>, vector<8x256xf32>
    tpu.vector_store %arg6[%c0_6, %10], %9 {strides = array<i32>} : memref<8x512xf32, #tpu.memory_space<vmem>>, vector<8x256xf32>,
    %c0_7 = arith.constant 0 : index
    %c0_8 = arith.constant 0 : index
    %12 = vector.load %arg7[%c0_7, %c0_8] : memref<8x1xf32, #tpu.memory_space<vmem>>, vector<8x1xf32>
    %cst_9 = arith.constant dense<0.000000e+00> : vector<8xf32>
    %13 = vector.multi_reduction <add>, %9, %cst_9 [1] : vector<8x256xf32> to vector<8xf32>
    %14 = vector.shape_cast %13 : vector<8xf32> to vector<8x1xf32>
    %15 = arith.addf %12, %14 : vector<8x1xf32>
    %c0_10 = arith.constant 0 : index
    %c0_11 = arith.constant 0 : index
    %16 = vector.load %arg7[%c0_10, %c0_11] : memref<8x1xf32, #tpu.memory_space<vmem>>, vector<8x1xf32>
    tpu.vector_store %arg7[%c0_10, %c0_11], %15 {strides = array<i32>} : memref<8x1xf32, #tpu.memory_space<vmem>>, vector<8x1xf32>,
    %c1_i32 = arith.constant 1 : i32
    %17 = arith.cmpi eq, %arg0, %c1_i32 : i32
    %18 = arith.extui %17 : i1 to i32
    %c0_i32_12 = arith.constant 0 : i32
    %19 = arith.cmpi ne, %18, %c0_i32_12 : i32
    scf.if %19 {
      %c0_13 = arith.constant 0 : index
      %c0_14 = arith.constant 0 : index
      %20 = vector.load %arg7[%c0_13, %c0_14] : memref<8x1xf32, #tpu.memory_space<vmem>>, vector<8x1xf32>
      %cst_15 = arith.constant 0.0357142873 : f32
      %21 = vector.broadcast %cst_15 : f32 to vector<8x1xf32>
      %22 = arith.mulf %20, %21 : vector<8x1xf32>
      %cst_16 = arith.constant 0.000000e+00 : f32
      %23 = vector.broadcast %cst_16 : f32 to vector<8x1xf32>
      %c0_17 = arith.constant 0 : index
      %c0_18 = arith.constant 0 : index
      %24 = vector.load %arg8[%c0_17, %c0_18] : memref<8x1xf32, #tpu.memory_space<vmem>>, vector<8x1xf32>
      tpu.vector_store %arg8[%c0_17, %c0_18], %23 {strides = array<i32>} : memref<8x1xf32, #tpu.memory_space<vmem>>, vector<8x1xf32>,
      %c0_i32_19 = arith.constant 0 : i32
      %c2_i32 = arith.constant 2 : i32
      %25 = arith.addi %c0_i32_19, %c2_i32 : i32
      %c1_i32_20 = arith.constant 1 : i32
      scf.for %arg9 = %c0_i32_19 to %25 step %c1_i32_20  : i32 {
        %c1_i32_34 = arith.constant 1 : i32
        %38 = arith.muli %arg9, %c1_i32_34 : i32
        %c0_i32_35 = arith.constant 0 : i32
        %39 = arith.addi %c0_i32_35, %38 : i32
        %c0_i32_36 = arith.constant 0 : i32
        %c2_i32_37 = arith.constant 2 : i32
        %40 = arith.addi %c0_i32_36, %c2_i32_37 : i32
        %c1_i32_38 = arith.constant 1 : i32
        scf.for %arg10 = %c0_i32_36 to %40 step %c1_i32_38  : i32 {
          %c1_i32_40 = arith.constant 1 : i32
          %41 = arith.muli %arg10, %c1_i32_40 : i32
          %c0_i32_41 = arith.constant 0 : i32
          %42 = arith.addi %c0_i32_41, %41 : i32
          %c0_i32_42 = arith.constant 0 : i32
          %43 = arith.cmpi eq, %42, %c0_i32_42 : i32
          %c7_i32 = arith.constant 7 : i32
          %c7_i32_43 = arith.constant 7 : i32
          %44 = arith.select %43, %c7_i32, %c7_i32_43 : i32
          %c0_i32_44 = arith.constant 0 : i32
          %c1_i32_45 = arith.constant 1 : i32
          %45 = arith.muli %c0_i32_44, %c1_i32_45 : i32
          %c0_i32_46 = arith.constant 0 : i32
          %46 = arith.addi %c0_i32_46, %45 : i32
          %c256_i32_47 = arith.constant 256 : i32
          %47 = arith.muli %39, %c256_i32_47 : i32
          %c128_i32 = arith.constant 128 : i32
          %48 = arith.muli %42, %c128_i32 : i32
          %49 = arith.addi %47, %48 : i32
          %c128_i32_48 = arith.constant 128 : i32
          %50 = arith.muli %46, %c128_i32_48 : i32
          %51 = arith.addi %49, %50 : i32
          %52 = tpu.assume_multiple %51, 128 : i32
          %c0_49 = arith.constant 0 : index
          %53 = arith.index_cast %52 : i32 to index
          %54 = vector.load %arg6[%c0_49, %53] : memref<8x512xf32, #tpu.memory_space<vmem>>, vector<8x128xf32>
          %55 = tpu.iota {dimensions = array<i32: 1>} : vector<1x128xi32>
          %c128_i32_50 = arith.constant 128 : i32
          %56 = arith.muli %46, %c128_i32_50 : i32
          %57 = vector.broadcast %56 : i32 to vector<1x128xi32>
          %58 = arith.addi %55, %57 : vector<1x128xi32>
          %59 = vector.broadcast %44 : i32 to vector<1x128xi32>
          %60 = arith.cmpi slt, %58, %59 : vector<1x128xi32>
          %61 = arith.extui %60 : vector<1x128xi1> to vector<1x128xi32>
          %62 = arith.sitofp %61 : vector<1x128xi32> to vector<1x128xf32>
          %63 = vector.broadcast %22 : vector<8x1xf32> to vector<8x128xf32>
          %64 = arith.subf %54, %63 : vector<8x128xf32>
          %65 = vector.broadcast %62 : vector<1x128xf32> to vector<8x128xf32>
          %66 = arith.mulf %64, %65 : vector<8x128xf32>
          %c0_51 = arith.constant 0 : index
          %c0_52 = arith.constant 0 : index
          %67 = vector.load %arg8[%c0_51, %c0_52] : memref<8x1xf32, #tpu.memory_space<vmem>>, vector<8x1xf32>
          %68 = arith.mulf %66, %66 : vector<8x128xf32>
          %cst_53 = arith.constant dense<0.000000e+00> : vector<8xf32>
          %69 = vector.multi_reduction <add>, %68, %cst_53 [1] : vector<8x128xf32> to vector<8xf32>
          %70 = vector.shape_cast %69 : vector<8xf32> to vector<8x1xf32>
          %71 = arith.addf %67, %70 : vector<8x1xf32>
          %c0_54 = arith.constant 0 : index
          %c0_55 = arith.constant 0 : index
          %72 = vector.load %arg8[%c0_54, %c0_55] : memref<8x1xf32, #tpu.memory_space<vmem>>, vector<8x1xf32>
          tpu.vector_store %arg8[%c0_54, %c0_55], %71 {strides = array<i32>} : memref<8x1xf32, #tpu.memory_space<vmem>>, vector<8x1xf32>,
          %c1_i32_56 = arith.constant 1 : i32
        }
        %c2_i32_39 = arith.constant 2 : i32
      }
      %c2_i32_21 = arith.constant 2 : i32
      %c0_22 = arith.constant 0 : index
      %c0_23 = arith.constant 0 : index
      %26 = vector.load %arg8[%c0_22, %c0_23] : memref<8x1xf32, #tpu.memory_space<vmem>>, vector<8x1xf32>
      %cst_24 = arith.constant 0.0357142873 : f32
      %27 = vector.broadcast %cst_24 : f32 to vector<8x1xf32>
      %28 = arith.mulf %26, %27 : vector<8x1xf32>
      %cst_25 = arith.constant 9.99999974E-6 : f32
      %29 = vector.broadcast %cst_25 : f32 to vector<8x1xf32>
      %30 = arith.addf %28, %29 : vector<8x1xf32>
      %31 = math.rsqrt %30 : vector<8x1xf32>
      %c0_26 = arith.constant 0 : index
      %c0_27 = arith.constant 0 : index
      %32 = vector.load %arg3[%c0_26, %c0_27] : memref<8x1xf32, #tpu.memory_space<vmem>>, vector<8x1xf32>
      %33 = arith.mulf %32, %31 : vector<8x1xf32>
      %c0_28 = arith.constant 0 : index
      %c0_29 = arith.constant 0 : index
      %34 = vector.load %arg4[%c0_28, %c0_29] : memref<8x1xf32, #tpu.memory_space<vmem>>, vector<8x1xf32>
      %35 = arith.mulf %33, %22 : vector<8x1xf32>
      %36 = arith.subf %34, %35 : vector<8x1xf32>
      %c0_i32_30 = arith.constant 0 : i32
      %c2_i32_31 = arith.constant 2 : i32
      %37 = arith.addi %c0_i32_30, %c2_i32_31 : i32
      %c1_i32_32 = arith.constant 1 : i32
      scf.for %arg9 = %c0_i32_30 to %37 step %c1_i32_32  : i32 {
        %c1_i32_34 = arith.constant 1 : i32
        %38 = arith.muli %arg9, %c1_i32_34 : i32
        %c0_i32_35 = arith.constant 0 : i32
        %39 = arith.addi %c0_i32_35, %38 : i32
        %c0_i32_36 = arith.constant 0 : i32
        %c1_i32_37 = arith.constant 1 : i32
        %40 = arith.muli %c0_i32_36, %c1_i32_37 : i32
        %c0_i32_38 = arith.constant 0 : i32
        %41 = arith.addi %c0_i32_38, %40 : i32
        %c256_i32_39 = arith.constant 256 : i32
        %42 = arith.muli %39, %c256_i32_39 : i32
        %c128_i32 = arith.constant 128 : i32
        %43 = arith.muli %41, %c128_i32 : i32
        %44 = arith.addi %42, %43 : i32
        %45 = tpu.assume_multiple %44, 128 : i32
        %c0_40 = arith.constant 0 : index
        %46 = arith.index_cast %45 : i32 to index
        %47 = vector.load %arg6[%c0_40, %46] : memref<8x512xf32, #tpu.memory_space<vmem>>, vector<8x128xf32>
        %c128_i32_41 = arith.constant 128 : i32
        %48 = arith.addi %45, %c128_i32_41 : i32
        %c0_42 = arith.constant 0 : index
        %49 = arith.index_cast %48 : i32 to index
        %50 = vector.load %arg6[%c0_42, %49] : memref<8x512xf32, #tpu.memory_space<vmem>>, vector<8x128xf32>
        %51 = vector.broadcast %33 : vector<8x1xf32> to vector<8x128xf32>
        %52 = arith.mulf %47, %51 : vector<8x128xf32>
        %53 = vector.broadcast %36 : vector<8x1xf32> to vector<8x128xf32>
        %54 = arith.addf %52, %53 : vector<8x128xf32>
        %cst_43 = arith.constant 0.000000e+00 : f32
        %55 = vector.broadcast %cst_43 : f32 to vector<8x128xf32>
        %56 = arith.maximumf %54, %55 : vector<8x128xf32>
        %57 = vector.broadcast %33 : vector<8x1xf32> to vector<8x128xf32>
        %58 = arith.mulf %50, %57 : vector<8x128xf32>
        %59 = vector.broadcast %36 : vector<8x1xf32> to vector<8x128xf32>
        %60 = arith.addf %58, %59 : vector<8x128xf32>
        %cst_44 = arith.constant 0.000000e+00 : f32
        %61 = vector.broadcast %cst_44 : f32 to vector<8x128xf32>
        %62 = arith.maximumf %60, %61 : vector<8x128xf32>
        %c128_i32_45 = arith.constant 128 : i32
        %63 = arith.muli %41, %c128_i32_45 : i32
        %64 = tpu.assume_multiple %63, 128 : i32
        %65 = arith.maximumf %56, %62 : vector<8x128xf32>
        %66 = arith.index_cast %39 : i32 to index
        %c0_46 = arith.constant 0 : index
        %67 = arith.index_cast %64 : i32 to index
        %68 = vector.load %arg5[%66, %c0_46, %67] : memref<2x8x128xf32, #tpu.memory_space<vmem>>, vector<1x8x128xf32>
        %69 = vector.shape_cast %68 : vector<1x8x128xf32> to vector<8x128xf32>
        %70 = vector.shape_cast %65 : vector<8x128xf32> to vector<1x8x128xf32>
        tpu.vector_store %arg5[%66, %c0_46, %67], %70 {strides = array<i32>} : memref<2x8x128xf32, #tpu.memory_space<vmem>>, vector<1x8x128xf32>,
        %c1_i32_47 = arith.constant 1 : i32
      }
      %c2_i32_33 = arith.constant 2 : i32
    } else {
    }
    return
  }
  func.func @transform_0(%arg0: i32) -> (i32, i32, i32) {
    %c0_i32 = arith.constant 0 : i32
    %c0_i32_0 = arith.constant 0 : i32
    %c0_i32_1 = arith.constant 0 : i32
    return %c0_i32, %c0_i32_0, %arg0 : i32, i32, i32
  }
  func.func @transform_1(%arg0: i32) -> (i32, i32, i32) {
    %c0_i32 = arith.constant 0 : i32
    %c0_i32_0 = arith.constant 0 : i32
    %c0_i32_1 = arith.constant 0 : i32
    %c0_i32_2 = arith.constant 0 : i32
    return %c0_i32, %c0_i32_0, %c0_i32_1 : i32, i32, i32
  }
  func.func @transform_2(%arg0: i32) -> (i32, i32) {
    %c0_i32 = arith.constant 0 : i32
    %c0_i32_0 = arith.constant 0 : i32
    %c0_i32_1 = arith.constant 0 : i32
    return %c0_i32, %c0_i32_0 : i32, i32
  }
  func.func @transform_3(%arg0: i32) -> (i32, i32) {
    %c0_i32 = arith.constant 0 : i32
    %c0_i32_0 = arith.constant 0 : i32
    %c0_i32_1 = arith.constant 0 : i32
    return %c0_i32, %c0_i32_0 : i32, i32
  }
  func.func @transform_4(%arg0: i32) -> (i32, i32, i32) {
    %c0_i32 = arith.constant 0 : i32
    %c0_i32_0 = arith.constant 0 : i32
    %c0_i32_1 = arith.constant 0 : i32
    %c0_i32_2 = arith.constant 0 : i32
    return %c0_i32, %c0_i32_0, %c0_i32_1 : i32, i32, i32
  }
}

</mosaic_0001>

<bundles_post_ra>
// kernel: tpu_custom_call.1
= control target key start
LH: loop header
LB: loop body
LE: loop exit
PB: predicated region body
PF: predicated region fallthrough
CT: control target
= control target key end

     0   :  { %9 = vsyncpa [#allocation6], 0  ;;  %s876_s0 = inlined_call_operand.hbm [shape: bf16[1,16,512], index: 0, kind: input, shape index: {}]   ;;  %s877_s1 = inlined_call_operand.vmem [shape: bf16[1,8,16], index: 1, kind: input, shape index: {}]   ;;  %s878_s2 = inlined_call_operand.vmem [shape: f32[8,1], index: 2, kind: input, shape index: {}]   ;;  %s879_s3 = inlined_call_operand.vmem [shape: f32[8,1], index: 3, kind: input, shape index: {}]   ;;  %s880_s4 = inlined_call_operand.hbm [shape: f32[2,8,128], index: 4, kind: output, shape index: {}]  }
   0x1   :  { %11 = vsyncpa [#allocation6 + $0x1], 0 }
   0x2   :  { %12 = vsyncpa [#allocation7], 0  ;;  %s731_s15 = smov 0   ;;  %s733_s16 = smov 0  }
   0x3   :  { %s735_s17 = smov 0   ;;  %s737_s18 = smov 0  }
   0x4 LB: > { %s750_s19 = sadd.s32 4294967295, %s679_s18   ;;  %s753_s20 = sadd.s32 1, %s679_s18   ;;  %s679_s18 = sphi %s737_s18, %s888_s18   ;;  %s675_s17 = sphi %s735_s17, %s887_s17   ;;  %s671_s16 = sphi %s733_s16, %s886_s16   ;;  %s667_s15 = sphi %s731_s15, %s885_s15  }
   0x5   : > { %s22_s21 = ssub.s32 %s679_s18, %s753_s20  ;;  %s25_s22 = sadd.s32 1, %s675_s17 }
   0x6   : > { %p23_p0 = scmp.eq.s32.totalorder %s22_s21, 0  ;;  %p32_p1 = scmp.ne.s32.totalorder %s675_s17, %s671_s16 }
   0x7   : > { %p33_p2 = scmp.eq.s32.totalorder %s679_s18, 0  ;;  %p38_p3 = scmp.ne.s32.totalorder %s671_s16, %s667_s15 }
   0x8   : > { %s763_s23 = scalar_select %p23_p0, %s675_s17, %s25_s22  }
   0x9   : > { %p34_p4 = por %p33_p2, %p32_p1  ;;  %p39_p5 = scmp.eq.s32.totalorder %s750_s19, 0 }
   0xa   : > { %p499_p6 = scmp.lt.s32.totalorder %s679_s18, 2  ;;  %s155_s25 = sand.u32 1, %s675_s17  }
   0xb   : > { %p767_p7 = por %p39_p5, %p38_p3  ;;  %s464_s26 = sshll.u32 %s155_s25, 4 }
   0xc   : > { %s488_s27 = sshll.u32 %s679_s18, 7  ;;  %s159_s5 = scalar_lea.vmem [#allocation5], %s464_s26 }
   0xd   : > { %s882_s24 = scalar_select %p767_p7, 1, 0 }
   0xe   : > { %s776_s30 = scalar_lea.hbm %s876_s0, %s488_s27  ;;  %s166_s6 = sshll.u32 %s159_s5, 4  ;;  %s778_s6 = int_to_ptr.vmem [resolvable:$true] %s166_s6 }
   0xf   : > { %p780_p8 = pnand %p499_p6, %p34_p4  ;;  %s784_s8 = scalar_lea.sflag [#allocation6], %s155_s25 }
  0x10   : > { %s577_s9 = scalar_lea.hbm %s776_s30, 256  ;;  %s582_s12 = scalar_lea.hbm %s876_s0, 512 }
  0x11   : > { %p578_p9 = scmp.ne.s32.totalorder %s776_s30, %s577_s9  ;;  %p579_p10 = pneg %p780_p8 }
  0x12   : > { %p583_p13 = scmp.lt.s32.totalorder %s776_s30, %s876_s0  ;;  %p584_p0 = scmp.lt.s32.totalorder %s582_s12, %s577_s9 }
  0x13   : > { %p580_p11 = pnand %p579_p10, %p578_p9 }
  0x14   : > { %p585_p1 = por %p584_p0, %p583_p13 }
  0x15   : > { %p581_p12 = pneg %p580_p11 }
  0x17   : > { %p586_p2 = pnand %p585_p1, %p581_p12 }
  0x19   : > { %589 = shalt.err (!%p586_p2)
}
  0x1a   : > { %s590_s15 = scalar_lea.vmem %s778_s6, 256  ;;  %s693_s21 = smov [#allocation5]  }
  0x1b   : > { %p591_p3 = scmp.ne.s32.totalorder %s778_s6, %s590_s15  ;;  %s595_s22 = sshll.u32 %s693_s21, 4  ;;  %s596_s22 = int_to_ptr.vmem [resolvable:$false] %s595_s22 }
  0x1c   : > { %s597_s25 = scalar_lea.vmem %s596_s22, 512  ;;  %p598_p6 = scmp.lt.s32.totalorder %s778_s6, %s596_s22 }
  0x1d   : > { %p593_p4 = pnand %p591_p3, %p579_p10  ;;  %p599_p9 = scmp.lt.s32.totalorder %s597_s25, %s590_s15 }
  0x1f   : > { %p594_p5 = pneg %p593_p4  ;;  %p600_p11 = por %p599_p9, %p598_p6 }
  0x21   : > { %p601_p7 = pnand %p600_p11, %p594_p5 }
  0x23   : > { %604 = shalt.err (!%p601_p7)
}
  0x24   : > { %s694_s26 = smov 256   ;;  %s695_s27 = smov 128  }
  0x25   : > { %s696_s28 = smov 8   ;;  %p467_p10 = scmp.ge.s32.totalorder %s679_s18, 1 }
  0x26   : > { %498 = dma.hbm_to_vmem [thread:$0]  (!%p780_p8), %s776_s30, 256, %s778_s6, %s784_s8, %s694_s26, %s695_s27, %s696_s28  }
  0x27   : > { %p174_p12 = scmp.lt.s32.totalorder %s679_s18, 3 }
  0x29   : > { %p175_p13 = pnand %p467_p10, %p174_p12 }
  0x2a   : > { %s180_s29 = sand.u32 (!%p175_p13), 1, %s671_s16   ;;  %p884_p7 = scmp.ne.s32.totalorder (!%p175_p13), %s882_s24, 0 }
  0x2b   : > { %178 = sbr.rel (%p175_p13) target bundleno = 866 (0x362), region = 36  ;;  %s468_s5 = sshll.u32 (!%p175_p13), %s180_s29, 4 }
  0x2c   : > { %s181_s9 = scalar_lea.sflag (!%p175_p13), [#allocation6], %s180_s29  ;;  %s184_s10 = scalar_lea.vmem (!%p175_p13), [#allocation5], %s468_s5 }
  0x30   : > { %658 = dma.done.wait (%p884_p7), %s181_s9, 256  }
  0x31   : > { %660 = vsyncadd (%p884_p7), %s181_s9, 4294967040  ;;  %p469_p0 = scmp.ne.s32.totalorder %s750_s19, 0 }
  0x33   : > { %209 = sbr.rel (%p469_p0) target bundleno = 58 (0x3a), region = 44 }
  0x38   : > { %vm210_vm0 = vcmask 7168   ;;  %v697_v0 = vmov 0.0  }
  0x39   : > { %211 = vst.msk [vmem:[#allocation3] sm:$0xff] %vm210_vm0, %v697_v0 }
  0x3a PF: > { %v570_v1 = vld [vmem:[%s184_s10 + $0x4] ss:$8 sps:$4 sm:$0xff]   ;;  %v572_v2 = vld [vmem:[%s184_s10] ss:$8 sps:$4 sm:$0xff]   ;;  %v698_v3 = vmov 0   ;;  %vm226_vm1 = vcmask 130048  }
  0x3b   : > { %262 = vmatprep.mubr.bf16.mxu0 %v698_v3  ;;  %244 = vmatprep.subr.bf16.mxu0 %v570_v1  ;;  %v213_v4 = vld [vmem:[%s877_s1] sm:$0xf]  ;;  %s470_s24 = sshll.u32 %s750_s19, 8  ;;  %vm282_vm2 = vcmask 7168   ;;  %p475_p8 = scmp.ne.s32.totalorder %s750_s19, 1 }
  0x3c   : > { %245 = vmatpush1.bf16.msra.mxu0 %v572_v2  ;;  %s271_s6 = sshra.s32 %s470_s24, 7  ;;  %s820_s11 = smov (!%p475_p8), 0  }
  0x3d   : > { %s474_s7 = sshll.u32 %s271_s6, 3 }
  0x3e   : > { %s274_s8 = scalar_lea.vmem [#allocation2], %s474_s7 }
  0x3f   : > { %473 = vmatmul.mubr.msk.bf16.vlgmr.msra.gmra.mxu0 %vm226_vm1, %v213_v4 }
  0x40   : > { %v277_v10 = vld [vmem:[#allocation3] sm:$0xff] }
  0xff   : > { %v264_v5 = vpop.f32.mrf.mxu0 }
 0x100   : > { %275 = vst [vmem:[%s274_s8] sm:$0xff] %v264_v5 }
 0x101   : > { %v266_v6 = vpop.f32.mrf.mxu0 }
 0x102   : > { %276 = vst [vmem:[%s274_s8 + $0x8] sm:$0xff] %v266_v6  ;;  %v278_v7 = vadd.f32 %v266_v6, %v264_v5 }
 0x103   : > { %v268_v8 = vpop.f32.mrf.mxu0 }
 0x104   : > { %279 = vadd.xlane.f32.xlu0 %v278_v7 }
 0x105   : > { %v269_v9 = vpop.f32.mrf.mxu0 }
 0x18c   : > { %287 = sbr.rel (%p475_p8) target bundleno = 850 (0x352), region = 48 }
 0x18d   : > { %v280_v11 = vpop.xlane.xlu0 %279 }
 0x18e   : > { %v281_v12 = vadd.f32 %v280_v11, %v277_v10 }
 0x190   : > { %283 = vst.msk [vmem:[#allocation3] sm:$0xff] %vm282_vm2, %v281_v12 }
 0x191   : > { %v699_v15 = vmov 0.0  }
 0x192   : > { %290 = vst.msk [vmem:[#allocation4] sm:$0xff] %vm282_vm2, %v699_v15 }
 0x197   : > { %v288_v13 = vld [vmem:[#allocation3] sm:$0xff] }
 0x198   : > { %v289_v14 = vmul.f32 0.035714287, %v288_v13 }
 0x199 LB: >> { %s825_s12 = smov 0   ;;  %s683_s11 = sphi %s820_s11, %s296_s11  }
 0x19a LB: >>> { %v700_v16 = vmov 0   ;;  %s476_s13 = sshll.u32 %s683_s11, 8  ;;  %s477_s14 = sshll.u32 %s687_s12, 7  ;;  %v311_v17 = vlaneseq  ;;  %v701_v21 = vmov 0.0   ;;  %v323_v26 = vld [vmem:[#allocation4] sm:$0xff]  ;;  %s687_s12 = sphi %s825_s12, %s302_s12  }
 0x19b   : >>> { %573 = vset.pattern.permute.xlu0 %v700_v16  ;;  %s305_s15 = sadd.s32 %s477_s14, %s476_s13  ;;  %s302_s12 = sadd.s32 1, %s687_s12  }
 0x19c   : >>> { %318 = vperm.xlu0 %573, %v289_v14   ;;  %s306_s21 = sshra.s32 %s305_s15, 7  ;;  %v312_v18 = vand.u32 127, %v311_v17  ;;  %p299_p1 = scmp.ge.s32.totalorder %s302_s12, 2  }
 0x19d   : >>> { %s478_s22 = sshll.u32 %s306_s21, 3  ;;  %s296_s11 = sadd.s32 (%p299_p1), 1, %s683_s11  }
 0x19e   : >>> { %vm313_vm3 = vcmp.lt.s32.totalorder %v312_v18, 7  ;;  %s309_s25 = scalar_lea.vmem [#allocation2], %s478_s22  ;;  %p293_p2 = scmp.ge.s32.totalorder (%p299_p1), %s296_s11, 2  }
 0x19f   : >>> { %v310_v19 = vld [vmem:[%s309_s25] sm:$0xff]  ;;  %v479_v22 = vsel %vm313_vm3, 1.0, %v701_v21 }
 0x217   : >>> { %v319_v20 = vpop.permute.xlu0 %318 }
 0x218   : >>> { %v321_v23 = vsub.f32 %v310_v19, %v319_v20 }
 0x21a   : >>> { %v322_v24 = vmul.f32 %v479_v22, %v321_v23 }
 0x21c   : >>> { %v324_v25 = vmul.f32 %v322_v24, %v322_v24 }
 0x21e   : >>> { %325 = vadd.xlane.f32.xlu0 %v324_v25 }
 0x2a6   : >> { %301 = sbr.rel (!%p299_p1) target bundleno = 410 (0x19a), region = 107 }
 0x2a7   : >>> { %v326_v27 = vpop.xlane.xlu0 %325 }
 0x2a8   : >>> { %v327_v28 = vadd.f32 %v326_v27, %v323_v26 }
 0x2aa   : >>> { %328 = vst.msk [vmem:[#allocation4] sm:$0xff] %vm282_vm2, %v327_v28 }
 0x2ab   : > { %v333_v32 = vld [vmem:[%s878_s2] sm:$0xff] (%p293_p2)  ;;  %s841_s5 = smov (%p293_p2), 0  }
 0x2ac   : > { %v335_v35 = vld [vmem:[%s879_s3] sm:$0xff] (%p293_p2) }
 0x2ae   : > { %295 = sbr.rel (!%p293_p2) target bundleno = 409 (0x199), region = 118 }
 0x2b1   : > { %v329_v29 = vld [vmem:[#allocation4] sm:$0xff] (%p293_p2) }
 0x2b2   : > { %v330_v30 = vmul.f32 (%p293_p2), 0.035714287, %v329_v29 }
 0x2b4   : > { %v331_v31 = vadd.f32 1e-05, %v330_v30 }
 0x2b6   : > { %574 = vrsqrt.f32 %v331_v31 }
 0x2c3   : > { %v575_v33 = vpop.eup %574 }
 0x2c4   : > { %v334_v34 = vmul.f32 %v575_v33, %v333_v32 }
 0x2c6   : > { %v336_v36 = vmul.f32 %v334_v34, %v289_v14 }
 0x2c8   : > { %v337_v37 = vsub.f32 %v335_v35, %v336_v36 }
 0x2c9 LB: >> { %v702_v38 = vmov 0   ;;  %s480_s9 = sshll.u32 %s691_s5, 8  ;;  %s483_s11 = sshll.u32 %s691_s5, 3  ;;  %s691_s5 = sphi %s841_s5, %s343_s5  }
 0x2ca   : >> { %576 = vset.pattern.permute.xlu0 %v702_v38  ;;  %s350_s10 = sadd.s32 128, %s480_s9  ;;  %s345_s18 = sshra.s32 %s480_s9, 7 }
 0x2cb   : >> { %358 = vperm.xlu0 %576, %v334_v34   ;;  %s351_s30 = sshra.s32 %s350_s10, 7  ;;  %s481_s24 = sshll.u32 %s345_s18, 3 }
 0x2cc   : >> { %s482_s6 = sshll.u32 %s351_s30, 3  ;;  %s348_s7 = scalar_lea.vmem [#allocation2], %s481_s24 }
 0x2cd   : >> { %v349_v40 = vld [vmem:[%s348_s7] sm:$0xff]  ;;  %s354_s8 = scalar_lea.vmem [#allocation2], %s482_s6  ;;  %s375_s12 = scalar_lea.vmem [#allocation8], %s483_s11 }
 0x2ce   : >> { %v355_v41 = vld [vmem:[%s354_s8] sm:$0xff]  ;;  %s343_s5 = sadd.s32 1, %s691_s5  }
 0x2cf   : >> { %364 = vperm.xlu0 %576, %v337_v37   ;;  %p340_p3 = scmp.ge.s32.totalorder %s343_s5, 2  }
 0x346   : >> { %v359_v39 = vpop.permute.xlu0 %358 }
 0x347   : >> { %v361_v42 = vmul.f32 %v359_v39, %v349_v40  ;;  %v369_v43 = vmul.f32 %v359_v39, %v355_v41 }
 0x34a   : >> { %v365_v44 = vpop.permute.xlu0 %364 }
 0x34b   : >> { %v367_v45 = vadd.f32 %v365_v44, %v361_v42  ;;  %v370_v46 = vadd.f32 %v369_v43, %v365_v44 }
 0x34d   : >> { %v368_v47 = vmax.f32 %v367_v45, 0.0  ;;  %v371_v48 = vmax.f32 %v370_v46, 0.0  ;;  %342 = sbr.rel (!%p340_p3) target bundleno = 713 (0x2c9), region = 129 }
 0x34f   : >> { %v372_v49 = vmax.f32 %v368_v47, %v371_v48 }
 0x351   : >> { %376 = vst [vmem:[%s375_s12] sm:$0xff] %v372_v49 }
 0x352 PF: > { %p500_p4 = scmp.eq.s32.totalorder %s750_s19, 1  ;;  %s703_s13 = smov [#allocation8]  }
 0x353   : > { %s383_s14 = sshll.u32 %s703_s13, 4  ;;  %s384_s14 = int_to_ptr.vmem [resolvable:$true] %s383_s14 }
 0x354   : > { %s605_s15 = scalar_lea.vmem %s384_s14, 256  ;;  %p612_p11 = scmp.lt.s32.totalorder %s384_s14, %s384_s14 }
 0x355   : > { %p606_p5 = scmp.ne.s32.totalorder %s384_s14, %s605_s15  ;;  %p613_p10 = scmp.lt.s32.totalorder %s605_s15, %s605_s15 }
 0x357   : > { %p607_p6 = pnand %p606_p5, %p500_p4  ;;  %p614_p12 = por %p613_p10, %p612_p11 }
 0x359   : > { %p608_p9 = pneg %p607_p6 }
 0x35b   : > { %p615_p13 = pnand %p614_p12, %p608_p9 }
 0x35d   : > { %618 = shalt.err (!%p615_p13)
}
 0x35e   : > { %s704_s21 = smov 128   ;;  %s705_s22 = smov 8  }
 0x35f   : > { %492 = dma.vmem_to_hbm [thread:$0]  (%p500_p4), %s384_s14, 256, %s880_s4, [#allocation7], %s704_s21, %s704_s21, %s705_s22  }
 0x360   : > { %662 = dma.done.wait (%p500_p4), [#allocation7], 256  }
 0x361   : > { %664 = vsyncadd (%p500_p4), [#allocation7], 4294967040 }
 0x362 PF: > { %p15_p7 = scmp.ge.s32.totalorder %s753_s20, 4   ;;  %s885_s15 = smov %s671_s16 }
 0x363   : > { %s886_s16 = smov %s675_s17  ;;  %s887_s17 = smov %s763_s23 }
 0x364   : > { %s888_s18 = smov %s753_s20  ;;  %17 = sbr.rel (!%p15_p7) target bundleno = 4 (0x4), region = 140 }
 0x369   :  { %399 = vsyncpa [#allocation6], 1 }
 0x36a   :  { %401 = vsyncpa [#allocation6 + $0x1], 1 }
 0x36b   :  { %402 = vsyncpa [#allocation7], 1 }
 0x36c   :  { %404 = vsyncpa [#allocation7 + $0x1], 1 }

</bundles_post_ra>
